<compile_context>
chip_gen: v6e
topology: v6e:2x2x1
jax: 0.10.0
libtpu: 0.0.40
codegen_flags: <defaults>
</compile_context>

<pallas_src>
import jax
import jax.numpy as jnp
from jax.experimental import pallas as pl
from jax.experimental.pallas import tpu as pltpu

TB_MAX = 2048  # batch-tile cap (rows per grid step)


def _round_up(a, m):
    return (a + m - 1) // m * m


def _cdiv(a, b):
    return (a + b - 1) // b


def svm_kernel(x_ref,
               w1_ref, b1_ref,
               w2_ref, b2_ref,
               w3_ref, b3_ref,
               w4_ref, b4_ref,
               o_ref):
    # fc1 + bn1 (folded) -> relu   (dropout is identity in eval mode)
    h = jnp.dot(x_ref[...], w1_ref[...],
                preferred_element_type=jnp.float32) + b1_ref[...]
    h = jnp.maximum(h, 0.0)

    # fc2 + bn2 (folded) -> relu   (unpadded (128, 64) weight block)
    h = jnp.dot(h.astype(jnp.bfloat16), w2_ref[...],
                preferred_element_type=jnp.float32) + b2_ref[...]
    h = jnp.maximum(h, 0.0)

    # fc3 + bn3 (folded) -> relu   (unpadded (64, 32) weight block)
    h = jnp.dot(h.astype(jnp.bfloat16), w3_ref[...],
                preferred_element_type=jnp.float32) + b3_ref[...]
    h = jnp.maximum(h, 0.0)

    # output head (32 -> 1): VPU multiply by the w4 row vector + cross-lane
    # sum (XLU), producing the narrow (TB, 1) logit block directly.
    o_ref[...] = (jnp.sum(h * w4_ref[...], axis=-1, keepdims=True)
                  + b4_ref[...])


def svm_classifier_forward(x, folded):
    """x: [B, input_size] float32. folded: BN-folded params (see fold_params).
    Returns [B, 1] float32 logits."""
    B, F = x.shape

    # Derive the batch tiling: avoid near-2x padding waste and guarantee at
    # least 2 grid steps (when B allows) so v7x's two TensorCores both work.
    num_tiles = _cdiv(B, TB_MAX)
    if num_tiles < 2 and B > 16:
        num_tiles = 2
    TB = _round_up(_cdiv(B, num_tiles), 16)   # 16-row granularity (bf16 sublanes)
    B_pad = num_tiles * TB

    xp = x if B_pad == B else jnp.pad(x, ((0, B_pad - B), (0, 0)))
    xp = xp.astype(jnp.bfloat16)   # bf16 MXU operand, halves x DMA bytes

    def resident(arr):
        # constant index_map -> block never changes -> stays VMEM-resident
        return pl.BlockSpec(arr.shape, lambda i: (0, 0))

    in_specs = [
        pl.BlockSpec((TB, F), lambda i: (i, 0)),
        resident(folded["w1"]), resident(folded["b1"]),
        resident(folded["w2"]), resident(folded["b2"]),
        resident(folded["w3"]), resident(folded["b3"]),
        resident(folded["w4"]), resident(folded["b4"]),
    ]

    # Advisory cost hint for XLA's scheduler around the custom call.
    flops = 2 * B_pad * (F * 128 + 128 * 64 + 64 * 32 + 32 * 1)
    weight_bytes = sum(int(folded[k].size) * folded[k].dtype.itemsize
                       for k in folded)
    bytes_accessed = B_pad * F * 2 + weight_bytes + B_pad * 1 * 4
    cost = pl.CostEstimate(flops=flops, transcendentals=0,
                           bytes_accessed=bytes_accessed)

    out = pl.pallas_call(
        svm_kernel,
        grid=(num_tiles,),
        in_specs=in_specs,
        out_specs=pl.BlockSpec((TB, 1), lambda i: (i, 0)),
        out_shape=jax.ShapeDtypeStruct((B_pad, 1), jnp.float32),
        compiler_params=pltpu.CompilerParams(
            dimension_semantics=("parallel",)),
        cost_estimate=cost,
    )(xp,
      folded["w1"], folded["b1"],
      folded["w2"], folded["b2"],
      folded["w3"], folded["b3"],
      folded["w4"], folded["b4"])

    return out[:B, :]


def make_params(key, input_size):
    """Deterministic synthetic parameters matching the PyTorch module's shapes.
    Linear weights stored as [in, out] (transposed vs torch) so y = x @ W + b."""
    dims = [(input_size, 128), (128, 64), (64, 32), (32, 1)]
    keys = jax.random.split(key, 16)
    params = {"eps": 1e-5}
    k = 0
    for layer, (din, dout) in enumerate(dims, start=1):
        params[f"w{layer}"] = jax.random.normal(keys[k], (din, dout), jnp.float32) * 0.1; k += 1
        params[f"b{layer}"] = jax.random.normal(keys[k], (1, dout), jnp.float32) * 0.1;   k += 1
        if layer < 4:
            params[f"gamma{layer}"] = 1.0 + 0.1 * jax.random.normal(keys[k], (1, dout), jnp.float32); k += 1
            params[f"beta{layer}"]  = 0.1 * jax.random.normal(keys[k], (1, dout), jnp.float32);       k += 1
            params[f"mean{layer}"]  = 0.05 * jnp.ones((1, dout), jnp.float32)
            params[f"var{layer}"]   = 1.2 * jnp.ones((1, dout), jnp.float32)
    return params


def fold_params(params):
    """Fold BN into the preceding Linear. Layers keep their natural (unpadded)
    widths. Matmul weights (w1..w3) are bf16; the head vector w4 is kept f32
    as a (1, 32) row for the VPU multiply + reduce; biases stay f32."""
    eps = params["eps"]
    folded = {}
    for layer in (1, 2, 3):
        scale = params[f"gamma{layer}"] / jnp.sqrt(params[f"var{layer}"] + eps)
        shift = params[f"beta{layer}"] - params[f"mean{layer}"] * scale
        folded[f"w{layer}"] = (params[f"w{layer}"] * scale).astype(jnp.bfloat16)
        folded[f"b{layer}"] = (params[f"b{layer}"] * scale + shift).astype(jnp.float32)
    folded["w4"] = params["w4"].reshape(1, -1).astype(jnp.float32)   # (1, 32) row
    folded["b4"] = params["b4"].reshape(1, 1).astype(jnp.float32)    # (1, 1) scalar
    return folded


def reference_forward(x, params):
    """Plain-JAX f32 reference (eval-mode BatchNorm, identity dropout)."""
    eps = params["eps"]
    h = x
    for layer in (1, 2, 3):
        h = h @ params[f"w{layer}"] + params[f"b{layer}"]
        h = (h - params[f"mean{layer}"]) * (
            params[f"gamma{layer}"] / jnp.sqrt(params[f"var{layer}"] + eps)
        ) + params[f"beta{layer}"]
        h = jnp.maximum(h, 0.0)
    return h @ params["w4"] + params["b4"]


if __name__ == "__main__":
    # TODO(synk): dropout implemented as inference-mode identity (train=False);
    # training-mode stochastic dropout would need pltpu.prng_* inside the kernel.
    input_size = 32
    batch = 8

    key = jax.random.PRNGKey(0)
    k_x, k_p = jax.random.split(key)
    x = jax.random.normal(k_x, (batch, input_size), jnp.float32)
    params = make_params(k_p, input_size)
    folded = fold_params(params)

    out = svm_classifier_forward(x, folded)
    out = jax.block_until_ready(out)

    ref = reference_forward(x, params)
    assert out.shape == (batch, 1), out.shape
    err = jnp.max(jnp.abs(out - ref))
    assert jnp.allclose(out, ref, atol=5e-2, rtol=5e-2), f"mismatch vs reference, max abs err={err}"

    print("KERNEL_OK")
</pallas_src>

<mosaic_0001>
module attributes {stable_mosaic.version = 11 : i64} {
  func.func @svm_kernel(%arg0: i32, %arg1: memref<16x32xbf16, #tpu.memory_space<vmem>>, %arg2: memref<32x128xbf16, #tpu.memory_space<vmem>>, %arg3: memref<1x128xf32, #tpu.memory_space<vmem>>, %arg4: memref<128x64xbf16, #tpu.memory_space<vmem>>, %arg5: memref<1x64xf32, #tpu.memory_space<vmem>>, %arg6: memref<64x32xbf16, #tpu.memory_space<vmem>>, %arg7: memref<1x32xf32, #tpu.memory_space<vmem>>, %arg8: memref<1x32xf32, #tpu.memory_space<vmem>>, %arg9: memref<1x1xf32, #tpu.memory_space<vmem>>, %arg10: memref<16x1xf32, #tpu.memory_space<vmem>>) attributes {dimension_semantics = [#tpu.dimension_semantics<parallel>], iteration_bounds = array<i64: 1>, scalar_prefetch = 0 : i64, scratch_operands = 0 : i64, tpu.core_type = #tpu.core_type<tc>, window_params = [{transform_indices = @transform_0, window_bounds = array<i64: 16, 32>}, {pipeline_mode = #tpu.pipeline_mode<synchronous>, transform_indices = @transform_1, window_bounds = array<i64: 32, 128>}, {pipeline_mode = #tpu.pipeline_mode<synchronous>, transform_indices = @transform_2, window_bounds = array<i64: 1, 128>}, {pipeline_mode = #tpu.pipeline_mode<synchronous>, transform_indices = @transform_3, window_bounds = array<i64: 128, 64>}, {pipeline_mode = #tpu.pipeline_mode<synchronous>, transform_indices = @transform_4, window_bounds = array<i64: 1, 64>}, {pipeline_mode = #tpu.pipeline_mode<synchronous>, transform_indices = @transform_5, window_bounds = array<i64: 64, 32>}, {pipeline_mode = #tpu.pipeline_mode<synchronous>, transform_indices = @transform_6, window_bounds = array<i64: 1, 32>}, {pipeline_mode = #tpu.pipeline_mode<synchronous>, transform_indices = @transform_7, window_bounds = array<i64: 1, 32>}, {pipeline_mode = #tpu.pipeline_mode<synchronous>, transform_indices = @transform_8, window_bounds = array<i64: 1, 1>}, {transform_indices = @transform_9, window_bounds = array<i64: 16, 1>}]} {
    %c0 = arith.constant 0 : index
    %c0_0 = arith.constant 0 : index
    %0 = vector.load %arg1[%c0, %c0_0] : memref<16x32xbf16, #tpu.memory_space<vmem>>, vector<16x32xbf16>
    %c0_1 = arith.constant 0 : index
    %c0_2 = arith.constant 0 : index
    %1 = vector.load %arg2[%c0_1, %c0_2] : memref<32x128xbf16, #tpu.memory_space<vmem>>, vector<32x128xbf16>
    %cst = arith.constant dense<0.000000e+00> : vector<16x128xf32>
    %2 = tpu.matmul %0, %1, %cst {dimension_numbers = #tpu.dot_dimension_numbers<[1], [0], [0], [1], [0, 0, 1, 1], [], []>} : vector<16x32xbf16>, vector<32x128xbf16>, vector<16x128xf32> -> vector<16x128xf32>
    %c0_3 = arith.constant 0 : index
    %c0_4 = arith.constant 0 : index
    %3 = vector.load %arg3[%c0_3, %c0_4] : memref<1x128xf32, #tpu.memory_space<vmem>>, vector<1x128xf32>
    %4 = vector.broadcast %3 : vector<1x128xf32> to vector<16x128xf32>
    %5 = arith.addf %2, %4 : vector<16x128xf32>
    %cst_5 = arith.constant 0.000000e+00 : f32
    %6 = vector.broadcast %cst_5 : f32 to vector<16x128xf32>
    %7 = arith.maximumf %5, %6 : vector<16x128xf32>
    %8 = arith.truncf %7 : vector<16x128xf32> to vector<16x128xbf16>
    %c0_6 = arith.constant 0 : index
    %c0_7 = arith.constant 0 : index
    %9 = vector.load %arg4[%c0_6, %c0_7] : memref<128x64xbf16, #tpu.memory_space<vmem>>, vector<128x64xbf16>
    %cst_8 = arith.constant dense<0.000000e+00> : vector<16x64xf32>
    %10 = tpu.matmul %8, %9, %cst_8 {dimension_numbers = #tpu.dot_dimension_numbers<[1], [0], [0], [1], [0, 0, 1, 1], [], []>} : vector<16x128xbf16>, vector<128x64xbf16>, vector<16x64xf32> -> vector<16x64xf32>
    %c0_9 = arith.constant 0 : index
    %c0_10 = arith.constant 0 : index
    %11 = vector.load %arg5[%c0_9, %c0_10] : memref<1x64xf32, #tpu.memory_space<vmem>>, vector<1x64xf32>
    %12 = vector.broadcast %11 : vector<1x64xf32> to vector<16x64xf32>
    %13 = arith.addf %10, %12 : vector<16x64xf32>
    %cst_11 = arith.constant 0.000000e+00 : f32
    %14 = vector.broadcast %cst_11 : f32 to vector<16x64xf32>
    %15 = arith.maximumf %13, %14 : vector<16x64xf32>
    %16 = arith.truncf %15 : vector<16x64xf32> to vector<16x64xbf16>
    %c0_12 = arith.constant 0 : index
    %c0_13 = arith.constant 0 : index
    %17 = vector.load %arg6[%c0_12, %c0_13] : memref<64x32xbf16, #tpu.memory_space<vmem>>, vector<64x32xbf16>
    %cst_14 = arith.constant dense<0.000000e+00> : vector<16x32xf32>
    %18 = tpu.matmul %16, %17, %cst_14 {dimension_numbers = #tpu.dot_dimension_numbers<[1], [0], [0], [1], [0, 0, 1, 1], [], []>} : vector<16x64xbf16>, vector<64x32xbf16>, vector<16x32xf32> -> vector<16x32xf32>
    %c0_15 = arith.constant 0 : index
    %c0_16 = arith.constant 0 : index
    %19 = vector.load %arg7[%c0_15, %c0_16] : memref<1x32xf32, #tpu.memory_space<vmem>>, vector<1x32xf32>
    %20 = vector.broadcast %19 : vector<1x32xf32> to vector<16x32xf32>
    %21 = arith.addf %18, %20 : vector<16x32xf32>
    %cst_17 = arith.constant 0.000000e+00 : f32
    %22 = vector.broadcast %cst_17 : f32 to vector<16x32xf32>
    %23 = arith.maximumf %21, %22 : vector<16x32xf32>
    %c0_18 = arith.constant 0 : index
    %c0_19 = arith.constant 0 : index
    %24 = vector.load %arg8[%c0_18, %c0_19] : memref<1x32xf32, #tpu.memory_space<vmem>>, vector<1x32xf32>
    %25 = vector.broadcast %24 : vector<1x32xf32> to vector<16x32xf32>
    %26 = arith.mulf %23, %25 : vector<16x32xf32>
    %cst_20 = arith.constant dense<0.000000e+00> : vector<16xf32>
    %27 = vector.multi_reduction <add>, %26, %cst_20 [1] : vector<16x32xf32> to vector<16xf32>
    %28 = vector.shape_cast %27 : vector<16xf32> to vector<16x1xf32>
    %c0_21 = arith.constant 0 : index
    %c0_22 = arith.constant 0 : index
    %29 = vector.load %arg9[%c0_21, %c0_22] : memref<1x1xf32, #tpu.memory_space<vmem>>, vector<1x1xf32>
    %30 = vector.broadcast %29 : vector<1x1xf32> to vector<16x1xf32>
    %31 = arith.addf %28, %30 : vector<16x1xf32>
    %c0_23 = arith.constant 0 : index
    %c0_24 = arith.constant 0 : index
    %32 = vector.load %arg10[%c0_23, %c0_24] : memref<16x1xf32, #tpu.memory_space<vmem>>, vector<16x1xf32>
    tpu.vector_store %arg10[%c0_23, %c0_24], %31 {strides = array<i32>} : memref<16x1xf32, #tpu.memory_space<vmem>>, vector<16x1xf32>,
    return
  }
  func.func @transform_0(%arg0: i32) -> (i32, i32) {
    %c0_i32 = arith.constant 0 : i32
    %c0_i32_0 = arith.constant 0 : i32
    return %arg0, %c0_i32 : i32, i32
  }
  func.func @transform_1(%arg0: i32) -> (i32, i32) {
    %c0_i32 = arith.constant 0 : i32
    %c0_i32_0 = arith.constant 0 : i32
    %c0_i32_1 = arith.constant 0 : i32
    return %c0_i32, %c0_i32_0 : i32, i32
  }
  func.func @transform_2(%arg0: i32) -> (i32, i32) {
    %c0_i32 = arith.constant 0 : i32
    %c0_i32_0 = arith.constant 0 : i32
    %c0_i32_1 = arith.constant 0 : i32
    return %c0_i32, %c0_i32_0 : i32, i32
  }
  func.func @transform_3(%arg0: i32) -> (i32, i32) {
    %c0_i32 = arith.constant 0 : i32
    %c0_i32_0 = arith.constant 0 : i32
    %c0_i32_1 = arith.constant 0 : i32
    return %c0_i32, %c0_i32_0 : i32, i32
  }
  func.func @transform_4(%arg0: i32) -> (i32, i32) {
    %c0_i32 = arith.constant 0 : i32
    %c0_i32_0 = arith.constant 0 : i32
    %c0_i32_1 = arith.constant 0 : i32
    return %c0_i32, %c0_i32_0 : i32, i32
  }
  func.func @transform_5(%arg0: i32) -> (i32, i32) {
    %c0_i32 = arith.constant 0 : i32
    %c0_i32_0 = arith.constant 0 : i32
    %c0_i32_1 = arith.constant 0 : i32
    return %c0_i32, %c0_i32_0 : i32, i32
  }
  func.func @transform_6(%arg0: i32) -> (i32, i32) {
    %c0_i32 = arith.constant 0 : i32
    %c0_i32_0 = arith.constant 0 : i32
    %c0_i32_1 = arith.constant 0 : i32
    return %c0_i32, %c0_i32_0 : i32, i32
  }
  func.func @transform_7(%arg0: i32) -> (i32, i32) {
    %c0_i32 = arith.constant 0 : i32
    %c0_i32_0 = arith.constant 0 : i32
    %c0_i32_1 = arith.constant 0 : i32
    return %c0_i32, %c0_i32_0 : i32, i32
  }
  func.func @transform_8(%arg0: i32) -> (i32, i32) {
    %c0_i32 = arith.constant 0 : i32
    %c0_i32_0 = arith.constant 0 : i32
    %c0_i32_1 = arith.constant 0 : i32
    return %c0_i32, %c0_i32_0 : i32, i32
  }
  func.func @transform_9(%arg0: i32) -> (i32, i32) {
    %c0_i32 = arith.constant 0 : i32
    %c0_i32_0 = arith.constant 0 : i32
    return %arg0, %c0_i32 : i32, i32
  }
}

</mosaic_0001>

<bundles_post_ra>
// kernel: tpu_custom_call.1
= control target key start
LH: loop header
LB: loop body
LE: loop exit
PB: predicated region body
PF: predicated region fallthrough
CT: control target
= control target key end

     0   :  { %v441_v0 = vmov 0.0   ;;  %vm442_vm0 = vmmov 0   ;;  %vm65_vm1 = vcmask 261120   ;;  %vm267_vm2 = vcmask 523264   ;;  %s565_s1 = inlined_call_operand.vmem [shape: bf16[32,128], index: 1, kind: input, shape index: {}]   ;;  %s566_s3 = inlined_call_operand.vmem [shape: bf16[128,64], index: 3, kind: input, shape index: {}]   ;;  %s567_s0 = inlined_call_operand.vmem [shape: bf16[16,32], index: 0, kind: input, shape index: {}]   ;;  %s568_s5 = inlined_call_operand.vmem [shape: bf16[64,32], index: 5, kind: input, shape index: {}]   ;;  %s569_s2 = inlined_call_operand.vmem [shape: f32[1,128], index: 2, kind: input, shape index: {}]   ;;  %s570_s4 = inlined_call_operand.vmem [shape: f32[1,64], index: 4, kind: input, shape index: {}]   ;;  %s571_s8 = inlined_call_operand.<no memory space> [shape: f32[1,1], index: 8, kind: input, shape index: {}]   ;;  %s572_s6 = inlined_call_operand.vmem [shape: f32[1,32], index: 6, kind: input, shape index: {}]   ;;  %s573_s7 = inlined_call_operand.vmem [shape: f32[1,32], index: 7, kind: input, shape index: {}]   ;;  %s574_s9 = inlined_call_operand.vmem [shape: f32[16,1], index: 9, kind: output, shape index: {}]  }
   0x1   :  { %384 = vmatprep.subr.bf16.mxu0 %v441_v0  ;;  %v426_v1 = vld [vmem:[%s565_s1 + $0x8] sm:$0xff]   ;;  %388 = vmatprep.mubr.msk.bf16.mxu0 %vm442_vm0, %v441_v0  ;;  %v427_v2 = vld [vmem:[%s565_s1] sm:$0xff]   ;;  %v429_v3 = vld [vmem:[%s566_s3 + $0x38] sm:$0xff]   ;;  %v14_v36 = vstv %s571_s8  ;;  %vm338_vm3 = vcmask 7168  }
   0x2   :  { %392 = vmatprep.subr.bf16.mxu1 %v441_v0  ;;  %408 = vmatprep.mubr.msk.bf16.mxu1 %vm442_vm0, %v441_v0  ;;  %v428_v4 = vld [vmem:[%s567_s0] sm:$0xff]   ;;  %v430_v5 = vld [vmem:[%s566_s3 + $0x30] sm:$0xff]   ;;  %v431_v6 = vld [vmem:[%s566_s3 + $0x28] sm:$0xff]   ;;  %15 = vst [vmem:[#allocation2] sm:$0x1] %v14_v36 }
   0x3   :  { %385 = vmatpush3.bf16.msra.mxu0 %v426_v1  ;;  %393 = vmatpush3.bf16.msra.mxu1 %v429_v3  ;;  %v432_v7 = vld [vmem:[%s566_s3 + $0x20] sm:$0xff]   ;;  %v433_v8 = vld [vmem:[%s566_s3 + $0x18] sm:$0xff]   ;;  %v434_v9 = vld [vmem:[%s566_s3 + $0x10] sm:$0xff]  }
   0x4   :  { %386 = vmatprep.subr.bf16.mxu0 %v441_v0  ;;  %394 = vmatprep.subr.bf16.mxu1 %v441_v0  ;;  %v435_v10 = vld [vmem:[%s566_s3 + $0x8] sm:$0xff]   ;;  %v436_v11 = vld [vmem:[%s566_s3] sm:$0xff]   ;;  %v437_v12 = vld [vmem:[%s568_s5 + $0x18] sm:$0xff]  }
   0x5   :  { %v345_v13 = vld [vmem:[%s569_s2] ss:$0 sm:$0xff]  ;;  %v438_v23 = vld [vmem:[%s568_s5 + $0x10] sm:$0xff]   ;;  %v439_v24 = vld [vmem:[%s568_s5 + $0x8] sm:$0xff]  }
   0x6   :  { %v440_v25 = vld [vmem:[%s568_s5] sm:$0xff]  }
   0x7   :  { %387 = vmatpush3.bf16.msra.mxu0 %v427_v2  ;;  %395 = vmatpush3.bf16.msra.mxu1 %v430_v5  ;;  %v350_v26 = vld [vmem:[%s570_s4] ss:$0 sm:$0xff] }
   0x8   :  { %412 = vmatprep.subr.bf16.mxu0 %v441_v0  ;;  %396 = vmatprep.subr.bf16.mxu1 %v441_v0  ;;  %v359_v37 = vld [vmem:[%s572_s6] ss:$0 sm:$0xff] }
   0x9   :  { %v365_v41 = vld [vmem:[%s573_s7] ss:$0 sm:$0xff] }
   0xa   :  { %389 = vmatmul.mubr.msk.bf16.vlgmr.msra.gmra.mxu0 %vm65_vm1, %v428_v4  ;;  %v366_v51 = vld [vmem:[#allocation2] ss:$0 sm:$0xff] }
   0xb   :  { %420 = vmatprep.mubr.msk.bf16.mxu0 %vm442_vm0, %v441_v0  ;;  %397 = vmatpush3.bf16.msra.mxu1 %v431_v6 }
   0xc   :  { %398 = vmatprep.subr.bf16.mxu1 %v441_v0  ;;  %413 = vmatpush3.bf16.msra.mxu0 %v437_v12 }
   0xd   :  { %414 = vmatprep.subr.bf16.mxu0 %v441_v0 }
   0xf   :  { %399 = vmatpush3.bf16.msra.mxu1 %v432_v7 }
  0x10   :  { %400 = vmatprep.subr.bf16.mxu1 %v441_v0  ;;  %415 = vmatpush3.bf16.msra.mxu0 %v438_v23 }
  0x11   :  { %416 = vmatprep.subr.bf16.mxu0 %v441_v0 }
  0x13   :  { %401 = vmatpush3.bf16.msra.mxu1 %v433_v8 }
  0x14   :  { %402 = vmatprep.subr.bf16.mxu1 %v441_v0  ;;  %417 = vmatpush3.bf16.msra.mxu0 %v439_v24 }
  0x15   :  { %418 = vmatprep.subr.bf16.mxu0 %v441_v0 }
  0x17   :  { %403 = vmatpush3.bf16.msra.mxu1 %v434_v9 }
  0x18   :  { %404 = vmatprep.subr.bf16.mxu1 %v441_v0  ;;  %419 = vmatpush3.bf16.msra.mxu0 %v440_v25 }
  0x1b   :  { %405 = vmatpush3.bf16.msra.mxu1 %v435_v10 }
  0x1c   :  { %406 = vmatprep.subr.bf16.mxu1 %v441_v0 }
  0x1f   :  { %407 = vmatpush3.bf16.msra.mxu1 %v436_v11 }
  0xca   :  { %v103_v14 = vpop.f32.mrf.mxu0 }
  0xcb   :  { %v104_v16 = vadd.f32 %v345_v13, %v103_v14 }
  0xcc   :  { %v390_v15 = vpop.f32.mrf.mxu0 }
  0xcd   :  { %v110_v20 = vmax.f32 %v104_v16, 0.0 }
  0xce   :  { %v106_v17 = vpop.f32.mrf.mxu0 }
  0xcf   :  { %v107_v18 = vadd.f32 %v345_v13, %v106_v17 }
  0xd0   :  { %v391_v19 = vpop.f32.mrf.mxu0 }
  0xd1   :  { %v111_v21 = vmax.f32 %v107_v18, 0.0 }
  0xd3   :  { %v112_v22 = vpack.c.bf16 %v111_v21, %v110_v20 }
  0xd5   :  { %409 = vmatmul.mubr.bf16.vlgmr.msra.gmra.mxu1 %v112_v22 }
 0x195   :  { %v218_v27 = vpop.f32.mrf.mxu1 }
 0x196   :  { %v219_v29 = vadd.f32 %v350_v26, %v218_v27 }
 0x197   :  { %v410_v28 = vpop.f32.mrf.mxu1 }
 0x198   :  { %v225_v33 = vmax.f32 %v219_v29, 0.0 }
 0x199   :  { %v221_v30 = vpop.f32.mrf.mxu1 }
 0x19a   :  { %v222_v31 = vadd.f32 %v350_v26, %v221_v30 }
 0x19b   :  { %v411_v32 = vpop.f32.mrf.mxu1 }
 0x19c   :  { %v226_v34 = vmax.f32 %v222_v31, 0.0 }
 0x19e   :  { %v227_v35 = vpack.c.bf16 %v226_v34, %v225_v33 }
 0x1a0   :  { %421 = vmatmul.mubr.msk.bf16.vlgmr.msra.gmra.mxu0 %vm267_vm2, %v227_v35 }
 0x260   :  { %v305_v38 = vpop.f32.mrf.mxu0 }
 0x261   :  { %v306_v39 = vadd.f32 %v359_v37, %v305_v38 }
 0x262   :  { %v422_v40 = vpop.f32.mrf.mxu0 }
 0x263   :  { %v312_v42 = vmax.f32 %v306_v39, 0.0 }
 0x264   :  { %v308_v43 = vpop.f32.mrf.mxu0 }
 0x265   :  { %v309_v44 = vadd.f32 %v359_v37, %v308_v43  ;;  %v321_v45 = vmul.f32 %v365_v41, %v312_v42 }
 0x266   :  { %v423_v46 = vpop.f32.mrf.mxu0 }
 0x267   :  { %v313_v47 = vmax.f32 %v309_v44, 0.0  ;;  %v323_v48 = vsel %vm65_vm1, %v321_v45, 0.0 }
 0x268   :  { %324 = vadd.xlane.f32.xlu0 %v323_v48 }
 0x269   :  { %v322_v49 = vmul.f32 %v365_v41, %v313_v47 }
 0x26b   :  { %v326_v50 = vsel %vm65_vm1, %v322_v49, 0.0 }
 0x26c   :  { %327 = vadd.xlane.f32.xlu0 %v326_v50 }
 0x2f1   :  { %v325_v52 = vpop.xlane.xlu0 %324 }
 0x2f2   :  { %v336_v53 = vadd.f32 %v366_v51, %v325_v52 }
 0x2f4   :  { %339 = vst.msk [vmem:[%s574_s9] sm:$0xff] %vm338_vm3, %v336_v53 }
 0x2f5   :  { %v328_v54 = vpop.xlane.xlu0 %327 }
 0x2f6   :  { %v337_v55 = vadd.f32 %v366_v51, %v328_v54 }
 0x2f8   :  { %340 = vst.msk [vmem:[%s574_s9 + $0x8] sm:$0xff] %vm338_vm3, %v337_v55 }

</bundles_post_ra>
